<compile_context>
chip_gen: v5e
topology: v5e:2x2
jax: 0.10.0
libtpu: 0.0.40
codegen_flags: <defaults>
</compile_context>

<pallas_src>
import functools

import numpy as np
import jax
import jax.numpy as jnp
from jax.experimental import pallas as pl
from jax.experimental.pallas import tpu as pltpu


def _attention_head_kernel(x_ref, wqkv_ref, bqkv_ref, wproj_ref, bproj_ref,
                           o_ref, acc_ref, *, scale, n_valid, approx_recip):
    """One (batch-block, head) pair per grid step.

    x_ref     : (Bt, Np, D)   VMEM, MXU compute dtype (bf16 or f32)
    wqkv_ref  : (3, D, Dh)    VMEM, this head's q/k/v weights, (in, out)
    bqkv_ref  : (3, 1, Dh)    VMEM, f32
    wproj_ref : (Dh, D)       VMEM, this head's slice of the proj weight
    bproj_ref : (1, D)        VMEM, f32
    o_ref     : (Bt, Np, D)   VMEM, output block (resident across the head axis)
    acc_ref   : (Bt*Np, D)    VMEM scratch, f32 accumulator across heads
    """
    bt, n, d = x_ref.shape
    dh = wqkv_ref.shape[-1]
    m = bt * n
    mxu = x_ref.dtype
    h_idx = pl.program_id(1)

    @pl.when(h_idx == 0)
    def _init():
        acc_ref[...] = jnp.zeros_like(acc_ref)

    x = x_ref[...].reshape(m, d)                       # contiguous reshape

    # ---- This head's Q/K/V: (M, D) x (D, Dh) MXU matmuls, f32 accumulate.
    q = jnp.dot(x, wqkv_ref[0], preferred_element_type=jnp.float32) + bqkv_ref[0]
    k = jnp.dot(x, wqkv_ref[1], preferred_element_type=jnp.float32) + bqkv_ref[1]
    v = jnp.dot(x, wqkv_ref[2], preferred_element_type=jnp.float32) + bqkv_ref[2]
    # Fold the softmax scale into Q (M*Dh multiplies instead of N*N).
    q = q * scale

    # Contiguous reshapes only — no N<->H transposes anywhere.
    qh = q.reshape(bt, n, dh).astype(mxu)
    kh = k.reshape(bt, n, dh).astype(mxu)
    vh = v.reshape(bt, n, dh).astype(mxu)

    # ---- Scores + softmax (single leading batch dim = Bt samples).
    s = jnp.einsum("bqd,bkd->bqk", qh, kh,
                   preferred_element_type=jnp.float32)          # (Bt, Np, Np) f32
    if n_valid < n:
        # Padded key columns get a large negative additive mask (exp -> 0).
        key_idx = jax.lax.broadcasted_iota(jnp.int32, (1, 1, n), 2)
        s = s + jnp.where(key_idx < n_valid, 0.0, -1e30).astype(jnp.float32)

    s = s - jnp.max(s, axis=-1, keepdims=True)
    p = jnp.exp(s)
    denom = jnp.sum(p, axis=-1, keepdims=True)                  # (Bt, Np, 1)
    # attn_drop: identity (p = 0.0 in the reference module).

    # ---- P @ V with the UN-normalized weights, normalize after (Dh << N work).
    wo = jnp.einsum("bqk,bkd->bqd", p.astype(mxu), vh,
                    preferred_element_type=jnp.float32)         # (Bt, Np, Dh) f32
    wo = wo * pl.reciprocal(denom, approx=approx_recip)

    # ---- Head merge folded into the output projection: accumulate this head's
    #      (M, Dh) x (Dh, D) contribution. No head-merge transpose.
    acc_ref[...] += jnp.dot(wo.reshape(m, dh).astype(mxu), wproj_ref[...],
                            preferred_element_type=jnp.float32)

    @pl.when(h_idx == pl.num_programs(1) - 1)
    def _finalize():
        out = acc_ref[...] + bproj_ref[...]
        # proj_drop: identity (p = 0.0 in the reference module).
        o_ref[...] = out.reshape(bt, n, d).astype(o_ref.dtype)


def _per_step_vmem_bytes(bt, n, d, dh, mxu_bytes, out_bytes):
    """Explicit accounting of live VMEM for one grid step."""
    m = bt * n
    x_io = 2 * m * d * mxu_bytes                  # x block, double-buffered
    out_io = 2 * m * d * out_bytes                # output block, double-buffered
    acc = m * d * 4                               # f32 accumulator scratch
    wts = 2 * (3 * d * dh + dh * d) * mxu_bytes \
        + 2 * (3 * dh + d) * 4                    # per-head weights + biases (dbl buf)
    interm = m * dh * (3 * 4 + 3 * mxu_bytes + 4 + mxu_bytes)   # q,k,v,wo (f32 + mxu copies)
    scores = bt * n * n * (2 * 4 + mxu_bytes)     # s, p (f32) + p mxu copy
    return x_io + out_io + acc + wts + interm + scores


def _pick_batch_block(B, n, d, dh, mxu_bytes, out_bytes, budget_bytes):
    """Largest divisor of B (capped at B//2 for v7x megacore) fitting the budget."""
    bt = B // 2 if B >= 2 else 1
    while bt > 1 and (B % bt
                      or _per_step_vmem_bytes(bt, n, d, dh, mxu_bytes,
                                              out_bytes) > budget_bytes):
        bt -= 1
    return max(bt, 1)


def attention_forward(x, w_qkv, b_qkv, w_proj, b_proj, *, n_heads,
                      mxu_dtype=jnp.bfloat16, out_dtype=None, batch_block=None):
    """Forward pass of the ViT3D `Attention` module.

    x      : (B, N, D)
    w_qkv  : (3*D, D)  PyTorch nn.Linear layout (out_features, in_features)
    b_qkv  : (3*D,)
    w_proj : (D, D)    PyTorch nn.Linear layout
    b_proj : (D,)
    """
    B, N, D = x.shape
    if D % n_heads:
        raise ValueError("dim must be divisible by n_heads")
    Dh = D // n_heads
    scale = Dh ** (-0.5)

    compute = np.dtype(mxu_dtype)
    out_dt = np.dtype(x.dtype if out_dtype is None else out_dtype)
    approx_recip = bool(compute != np.dtype(np.float32))

    # ---- Pad N (sublane axis) to a multiple of 8 so in-kernel reshapes stay
    #      relayout-free; padded keys are masked out in the kernel.
    n_pad = (-N) % 8
    Np = N + n_pad
    x_in = jnp.pad(x, ((0, 0), (0, n_pad), (0, 0))) if n_pad else x
    x_in = x_in.astype(compute)

    # ---- Wrapper-side (free, XLA) weight reshuffling into per-head slices:
    #      w_qkv_h : (H, 3, D, Dh)  (in, out) per head
    #      b_qkv_h : (H, 3, 1, Dh)
    #      w_proj_h: (H, Dh, D)      per-head slice of proj (head merge folded in)
    w_qkv_h = jnp.transpose(w_qkv.T.reshape(D, 3, n_heads, Dh),
                            (2, 1, 0, 3)).astype(compute)
    b_qkv_h = jnp.transpose(b_qkv.reshape(3, n_heads, Dh),
                            (1, 0, 2)).reshape(n_heads, 3, 1, Dh).astype(jnp.float32)
    w_proj_h = w_proj.T.reshape(n_heads, Dh, D).astype(compute)
    b_proj2 = b_proj.reshape(1, D).astype(jnp.float32)

    # ---- Generation-aware VMEM budget.
    try:
        vmem_cap = int(getattr(pltpu.get_tpu_info(), "vmem_capacity_bytes",
                               64 * 1024 * 1024))
    except Exception:  # no TPU info available at trace time
        vmem_cap = 64 * 1024 * 1024
    vmem_limit = int(min(vmem_cap * 3 // 4, 96 * 1024 * 1024))   # ~96MiB v5e/v6e, ~48MiB v7x
    budget = int(vmem_limit * 0.6)

    mxu_b = compute.itemsize
    out_b = out_dt.itemsize
    Bt = batch_block or _pick_batch_block(B, Np, D, Dh, mxu_b, out_b, budget)
    if B % Bt:
        raise ValueError("batch_block must divide the batch size")

    kernel = functools.partial(_attention_head_kernel, scale=scale,
                               n_valid=N, approx_recip=approx_recip)

    flops = (2 * B * Np * D * 3 * D      # QKV projection (all heads)
             + 2 * B * Np * Np * D       # Q @ K^T
             + 2 * B * Np * Np * D       # P @ V
             + 2 * B * Np * D * D)       # output projection
    transcendentals = B * n_heads * Np * Np
    bytes_accessed = (x_in.size * x_in.dtype.itemsize
                      + B * Np * D * out_b
                      + w_qkv_h.size * mxu_b + w_proj_h.size * mxu_b
                      + (b_qkv_h.size + b_proj2.size) * 4)

    out = pl.pallas_call(
        kernel,
        out_shape=jax.ShapeDtypeStruct((B, Np, D), out_dt),
        grid_spec=pltpu.PrefetchScalarGridSpec(
            num_scalar_prefetch=0,
            grid=(B // Bt, n_heads),                      # reduction (head) axis last
            in_specs=[
                pl.BlockSpec((Bt, Np, D), lambda b, h: (b, 0, 0)),        # x (resident over h)
                pl.BlockSpec((None, 3, D, Dh), lambda b, h: (h, 0, 0, 0)),  # per-head qkv weights
                pl.BlockSpec((None, 3, 1, Dh), lambda b, h: (h, 0, 0, 0)),  # per-head qkv bias
                pl.BlockSpec((None, Dh, D), lambda b, h: (h, 0, 0)),        # per-head proj slice
                pl.BlockSpec((1, D), lambda b, h: (0, 0)),                  # proj bias (tiny, const)
            ],
            out_specs=pl.BlockSpec((Bt, Np, D), lambda b, h: (b, 0, 0)),
            scratch_shapes=[pltpu.VMEM((Bt * Np, D), jnp.float32)],
        ),
        compiler_params=pltpu.CompilerParams(
            dimension_semantics=("parallel", "arbitrary"),
            vmem_limit_bytes=vmem_limit),
        cost_estimate=pl.CostEstimate(flops=int(flops),
                                      transcendentals=int(transcendentals),
                                      bytes_accessed=int(bytes_accessed)),
    )(x_in, w_qkv_h, b_qkv_h, w_proj_h, b_proj2)

    if n_pad:
        out = out[:, :N, :]
    return out


def attention_reference(x, w_qkv, b_qkv, w_proj, b_proj, *, n_heads):
    """Pure-JAX reference mirroring the PyTorch forward exactly."""
    B, N, D = x.shape
    head_dim = D // n_heads
    scale = head_dim ** (-0.5)

    qkv = x @ w_qkv.T + b_qkv                                # (B, N, 3D)
    qkv = qkv.reshape(B, N, 3, n_heads, head_dim)
    qkv = jnp.transpose(qkv, (2, 0, 3, 1, 4))                # (3, B, H, N, Dh)
    q, k, v = qkv[0], qkv[1], qkv[2]

    dp = jnp.einsum("bhnd,bhmd->bhnm", q, k) * scale
    attn = jax.nn.softmax(dp, axis=-1)
    out = jnp.einsum("bhnm,bhmd->bhnd", attn, v)             # (B, H, N, Dh)
    out = jnp.transpose(out, (0, 2, 1, 3)).reshape(B, N, D)
    return out @ w_proj.T + b_proj


if __name__ == "__main__":
    # Small shapes consistent with the module: batch=2, seq(=n_patches+1)=8,
    # dim=32, n_heads=4 (head_dim=8).
    B, N, D = 2, 8, 32
    n_heads = 4

    key = jax.random.PRNGKey(0)
    kx, kw1, kb1, kw2, kb2 = jax.random.split(key, 5)

    x = jax.random.normal(kx, (B, N, D), dtype=jnp.float32)

    # Parameters in PyTorch nn.Linear layout: weight = (out, in), bias = (out,).
    w_qkv = jax.random.normal(kw1, (3 * D, D), dtype=jnp.float32) * 0.02
    b_qkv = jax.random.normal(kb1, (3 * D,), dtype=jnp.float32) * 0.02
    w_proj = jax.random.normal(kw2, (D, D), dtype=jnp.float32) * 0.02
    b_proj = jax.random.normal(kb2, (D,), dtype=jnp.float32) * 0.02

    ref = attention_reference(x, w_qkv, b_qkv, w_proj, b_proj, n_heads=n_heads)

    # Fast path: bf16 MXU operands, f32 softmax/accumulation, approx reciprocal.
    out_bf16 = attention_forward(x, w_qkv, b_qkv, w_proj, b_proj,
                                 n_heads=n_heads, mxu_dtype=jnp.bfloat16)
    out_bf16 = jax.block_until_ready(out_bf16)
    assert out_bf16.shape == (B, N, D)
    assert jnp.allclose(out_bf16, ref, atol=5e-3, rtol=5e-2), \
        "bf16 kernel mismatch vs reference"

    # Full-f32 path: tight numerical check of the kernel structure.
    out_f32 = attention_forward(x, w_qkv, b_qkv, w_proj, b_proj,
                                n_heads=n_heads, mxu_dtype=jnp.float32)
    out_f32 = jax.block_until_ready(out_f32)
    assert jnp.allclose(out_f32, ref, atol=1e-4, rtol=1e-4), \
        "f32 kernel mismatch vs reference"

    print("KERNEL_OK")
</pallas_src>

<mosaic_0001>
module attributes {stable_mosaic.version = 11 : i64} {
  func.func @_attention_head_kernel(%arg0: i32, %arg1: i32, %arg2: memref<1x8x32xbf16, #tpu.memory_space<vmem>>, %arg3: memref<1x3x32x8xbf16, #tpu.memory_space<vmem>>, %arg4: memref<1x3x1x8xf32, #tpu.memory_space<vmem>>, %arg5: memref<1x8x32xbf16, #tpu.memory_space<vmem>>, %arg6: memref<1x32xf32, #tpu.memory_space<vmem>>, %arg7: memref<1x8x32xf32, #tpu.memory_space<vmem>>, %arg8: memref<8x32xf32, #tpu.memory_space<vmem>>) attributes {dimension_semantics = [#tpu.dimension_semantics<parallel>, #tpu.dimension_semantics<arbitrary>], iteration_bounds = array<i64: 2, 4>, scalar_prefetch = 0 : i64, scratch_operands = 1 : i64, tpu.core_type = #tpu.core_type<tc>, window_params = [{transform_indices = @transform_0, window_bounds = array<i64: 1, 8, 32>}, {transform_indices = @transform_1, window_bounds = array<i64: 1, 3, 32, 8>}, {transform_indices = @transform_2, window_bounds = array<i64: 1, 3, 1, 8>}, {transform_indices = @transform_3, window_bounds = array<i64: 1, 8, 32>}, {pipeline_mode = #tpu.pipeline_mode<synchronous>, transform_indices = @transform_4, window_bounds = array<i64: 1, 32>}, {transform_indices = @transform_5, window_bounds = array<i64: 1, 8, 32>}]} {
    %c0_i32 = arith.constant 0 : i32
    %0 = arith.cmpi eq, %arg1, %c0_i32 : i32
    %1 = arith.extui %0 : i1 to i32
    %c0_i32_0 = arith.constant 0 : i32
    %2 = arith.cmpi ne, %1, %c0_i32_0 : i32
    scf.if %2 {
      %cst_41 = arith.constant 0.000000e+00 : f32
      %58 = vector.broadcast %cst_41 : f32 to vector<8x32xf32>
      %c0_42 = arith.constant 0 : index
      %c0_43 = arith.constant 0 : index
      %59 = vector.load %arg8[%c0_42, %c0_43] : memref<8x32xf32, #tpu.memory_space<vmem>>, vector<8x32xf32>
      tpu.vector_store %arg8[%c0_42, %c0_43], %58 {strides = array<i32>} : memref<8x32xf32, #tpu.memory_space<vmem>>, vector<8x32xf32>,
    } else {
    }
    %c0 = arith.constant 0 : index
    %c0_1 = arith.constant 0 : index
    %c0_2 = arith.constant 0 : index
    %3 = vector.load %arg2[%c0, %c0_1, %c0_2] : memref<1x8x32xbf16, #tpu.memory_space<vmem>>, vector<1x8x32xbf16>
    %4 = vector.shape_cast %3 : vector<1x8x32xbf16> to vector<8x32xbf16>
    %c0_3 = arith.constant 0 : index
    %c0_4 = arith.constant 0 : index
    %c0_5 = arith.constant 0 : index
    %c0_6 = arith.constant 0 : index
    %5 = vector.load %arg3[%c0_3, %c0_4, %c0_5, %c0_6] : memref<1x3x32x8xbf16, #tpu.memory_space<vmem>>, vector<1x1x32x8xbf16>
    %6 = vector.shape_cast %5 : vector<1x1x32x8xbf16> to vector<32x8xbf16>
    %cst = arith.constant dense<0.000000e+00> : vector<8x8xf32>
    %7 = tpu.matmul %4, %6, %cst {dimension_numbers = #tpu.dot_dimension_numbers<[1], [0], [0], [1], [0, 0, 1, 1], [], []>} : vector<8x32xbf16>, vector<32x8xbf16>, vector<8x8xf32> -> vector<8x8xf32>
    %c0_7 = arith.constant 0 : index
    %c0_8 = arith.constant 0 : index
    %c0_9 = arith.constant 0 : index
    %c0_10 = arith.constant 0 : index
    %8 = vector.load %arg4[%c0_7, %c0_8, %c0_9, %c0_10] : memref<1x3x1x8xf32, #tpu.memory_space<vmem>>, vector<1x1x1x8xf32>
    %9 = vector.shape_cast %8 : vector<1x1x1x8xf32> to vector<1x8xf32>
    %10 = vector.broadcast %9 : vector<1x8xf32> to vector<8x8xf32>
    %11 = arith.addf %7, %10 : vector<8x8xf32>
    %c0_11 = arith.constant 0 : index
    %c1 = arith.constant 1 : index
    %c0_12 = arith.constant 0 : index
    %c0_13 = arith.constant 0 : index
    %12 = vector.load %arg3[%c0_11, %c1, %c0_12, %c0_13] : memref<1x3x32x8xbf16, #tpu.memory_space<vmem>>, vector<1x1x32x8xbf16>
    %13 = vector.shape_cast %12 : vector<1x1x32x8xbf16> to vector<32x8xbf16>
    %cst_14 = arith.constant dense<0.000000e+00> : vector<8x8xf32>
    %14 = tpu.matmul %4, %13, %cst_14 {dimension_numbers = #tpu.dot_dimension_numbers<[1], [0], [0], [1], [0, 0, 1, 1], [], []>} : vector<8x32xbf16>, vector<32x8xbf16>, vector<8x8xf32> -> vector<8x8xf32>
    %c0_15 = arith.constant 0 : index
    %c1_16 = arith.constant 1 : index
    %c0_17 = arith.constant 0 : index
    %c0_18 = arith.constant 0 : index
    %15 = vector.load %arg4[%c0_15, %c1_16, %c0_17, %c0_18] : memref<1x3x1x8xf32, #tpu.memory_space<vmem>>, vector<1x1x1x8xf32>
    %16 = vector.shape_cast %15 : vector<1x1x1x8xf32> to vector<1x8xf32>
    %17 = vector.broadcast %16 : vector<1x8xf32> to vector<8x8xf32>
    %18 = arith.addf %14, %17 : vector<8x8xf32>
    %c0_19 = arith.constant 0 : index
    %c2 = arith.constant 2 : index
    %c0_20 = arith.constant 0 : index
    %c0_21 = arith.constant 0 : index
    %19 = vector.load %arg3[%c0_19, %c2, %c0_20, %c0_21] : memref<1x3x32x8xbf16, #tpu.memory_space<vmem>>, vector<1x1x32x8xbf16>
    %20 = vector.shape_cast %19 : vector<1x1x32x8xbf16> to vector<32x8xbf16>
    %cst_22 = arith.constant dense<0.000000e+00> : vector<8x8xf32>
    %21 = tpu.matmul %4, %20, %cst_22 {dimension_numbers = #tpu.dot_dimension_numbers<[1], [0], [0], [1], [0, 0, 1, 1], [], []>} : vector<8x32xbf16>, vector<32x8xbf16>, vector<8x8xf32> -> vector<8x8xf32>
    %c0_23 = arith.constant 0 : index
    %c2_24 = arith.constant 2 : index
    %c0_25 = arith.constant 0 : index
    %c0_26 = arith.constant 0 : index
    %22 = vector.load %arg4[%c0_23, %c2_24, %c0_25, %c0_26] : memref<1x3x1x8xf32, #tpu.memory_space<vmem>>, vector<1x1x1x8xf32>
    %23 = vector.shape_cast %22 : vector<1x1x1x8xf32> to vector<1x8xf32>
    %24 = vector.broadcast %23 : vector<1x8xf32> to vector<8x8xf32>
    %25 = arith.addf %21, %24 : vector<8x8xf32>
    %cst_27 = arith.constant 0.353553385 : f32
    %26 = vector.broadcast %cst_27 : f32 to vector<8x8xf32>
    %27 = arith.mulf %11, %26 : vector<8x8xf32>
    %28 = vector.shape_cast %27 : vector<8x8xf32> to vector<1x8x8xf32>
    %29 = arith.truncf %28 : vector<1x8x8xf32> to vector<1x8x8xbf16>
    %30 = vector.shape_cast %18 : vector<8x8xf32> to vector<1x8x8xf32>
    %31 = arith.truncf %30 : vector<1x8x8xf32> to vector<1x8x8xbf16>
    %32 = vector.shape_cast %25 : vector<8x8xf32> to vector<1x8x8xf32>
    %33 = arith.truncf %32 : vector<1x8x8xf32> to vector<1x8x8xbf16>
    "tpu.trace_start"() <{level = 10 : i32, message = "bqd,bkd->bqk"}> : () -> ()
    %cst_28 = arith.constant dense<0.000000e+00> : vector<1x8x8xf32>
    %34 = tpu.matmul %29, %31, %cst_28 {dimension_numbers = #tpu.dot_dimension_numbers<[2], [2], [1], [1], [0, 0, 0, 1, 1, 1], [0], [0]>} : vector<1x8x8xbf16>, vector<1x8x8xbf16>, vector<1x8x8xf32> -> vector<1x8x8xf32>
    "tpu.trace_stop"() : () -> ()
    %cst_29 = arith.constant dense<0xFF800000> : vector<1x8xf32>
    %35 = vector.multi_reduction <maximumf>, %34, %cst_29 [2] : vector<1x8x8xf32> to vector<1x8xf32>
    %36 = vector.shape_cast %35 : vector<1x8xf32> to vector<1x8x1xf32>
    %37 = vector.broadcast %36 : vector<1x8x1xf32> to vector<1x8x8xf32>
    %38 = arith.subf %34, %37 : vector<1x8x8xf32>
    %39 = math.exp %38 : vector<1x8x8xf32>
    %cst_30 = arith.constant dense<0.000000e+00> : vector<1x8xf32>
    %40 = vector.multi_reduction <add>, %39, %cst_30 [2] : vector<1x8x8xf32> to vector<1x8xf32>
    %41 = vector.shape_cast %40 : vector<1x8xf32> to vector<1x8x1xf32>
    %42 = arith.truncf %39 : vector<1x8x8xf32> to vector<1x8x8xbf16>
    "tpu.trace_start"() <{level = 10 : i32, message = "bqk,bkd->bqd"}> : () -> ()
    %cst_31 = arith.constant dense<0.000000e+00> : vector<1x8x8xf32>
    %43 = tpu.matmul %42, %33, %cst_31 {dimension_numbers = #tpu.dot_dimension_numbers<[2], [1], [1], [2], [0, 0, 0, 1, 1, 2], [0], [0]>} : vector<1x8x8xbf16>, vector<1x8x8xbf16>, vector<1x8x8xf32> -> vector<1x8x8xf32>
    "tpu.trace_stop"() : () -> ()
    %44 = tpu.reciprocal %41 {approx = true} : vector<1x8x1xf32> -> vector<1x8x1xf32>
    %45 = vector.broadcast %44 : vector<1x8x1xf32> to vector<1x8x8xf32>
    %46 = arith.mulf %43, %45 : vector<1x8x8xf32>
    %c0_32 = arith.constant 0 : index
    %c0_33 = arith.constant 0 : index
    %47 = vector.load %arg8[%c0_32, %c0_33] : memref<8x32xf32, #tpu.memory_space<vmem>>, vector<8x32xf32>
    %48 = vector.shape_cast %46 : vector<1x8x8xf32> to vector<8x8xf32>
    %49 = arith.truncf %48 : vector<8x8xf32> to vector<8x8xbf16>
    %c0_34 = arith.constant 0 : index
    %c0_35 = arith.constant 0 : index
    %c0_36 = arith.constant 0 : index
    %50 = vector.load %arg5[%c0_34, %c0_35, %c0_36] : memref<1x8x32xbf16, #tpu.memory_space<vmem>>, vector<1x8x32xbf16>
    %51 = vector.shape_cast %50 : vector<1x8x32xbf16> to vector<8x32xbf16>
    %cst_37 = arith.constant dense<0.000000e+00> : vector<8x32xf32>
    %52 = tpu.matmul %49, %51, %cst_37 {dimension_numbers = #tpu.dot_dimension_numbers<[1], [0], [0], [1], [0, 0, 1, 1], [], []>} : vector<8x8xbf16>, vector<8x32xbf16>, vector<8x32xf32> -> vector<8x32xf32>
    %53 = arith.addf %47, %52 : vector<8x32xf32>
    %c0_38 = arith.constant 0 : index
    %c0_39 = arith.constant 0 : index
    %54 = vector.load %arg8[%c0_38, %c0_39] : memref<8x32xf32, #tpu.memory_space<vmem>>, vector<8x32xf32>
    tpu.vector_store %arg8[%c0_38, %c0_39], %53 {strides = array<i32>} : memref<8x32xf32, #tpu.memory_space<vmem>>, vector<8x32xf32>,
    %c3_i32 = arith.constant 3 : i32
    %55 = arith.cmpi eq, %arg1, %c3_i32 : i32
    %56 = arith.extui %55 : i1 to i32
    %c0_i32_40 = arith.constant 0 : i32
    %57 = arith.cmpi ne, %56, %c0_i32_40 : i32
    scf.if %57 {
      %c0_41 = arith.constant 0 : index
      %c0_42 = arith.constant 0 : index
      %58 = vector.load %arg8[%c0_41, %c0_42] : memref<8x32xf32, #tpu.memory_space<vmem>>, vector<8x32xf32>
      %c0_43 = arith.constant 0 : index
      %c0_44 = arith.constant 0 : index
      %59 = vector.load %arg6[%c0_43, %c0_44] : memref<1x32xf32, #tpu.memory_space<vmem>>, vector<1x32xf32>
      %60 = vector.broadcast %59 : vector<1x32xf32> to vector<8x32xf32>
      %61 = arith.addf %58, %60 : vector<8x32xf32>
      %62 = vector.shape_cast %61 : vector<8x32xf32> to vector<1x8x32xf32>
      %c0_45 = arith.constant 0 : index
      %c0_46 = arith.constant 0 : index
      %c0_47 = arith.constant 0 : index
      %63 = vector.load %arg7[%c0_45, %c0_46, %c0_47] : memref<1x8x32xf32, #tpu.memory_space<vmem>>, vector<1x8x32xf32>
      tpu.vector_store %arg7[%c0_45, %c0_46, %c0_47], %62 {strides = array<i32>} : memref<1x8x32xf32, #tpu.memory_space<vmem>>, vector<1x8x32xf32>,
    } else {
    }
    return
  }
  func.func @transform_0(%arg0: i32, %arg1: i32) -> (i32, i32, i32) {
    %c0_i32 = arith.constant 0 : i32
    %c0_i32_0 = arith.constant 0 : i32
    %c0_i32_1 = arith.constant 0 : i32
    return %arg0, %c0_i32, %c0_i32_0 : i32, i32, i32
  }
  func.func @transform_1(%arg0: i32, %arg1: i32) -> (i32, i32, i32, i32) {
    %c0_i32 = arith.constant 0 : i32
    %c0_i32_0 = arith.constant 0 : i32
    %c0_i32_1 = arith.constant 0 : i32
    %c0_i32_2 = arith.constant 0 : i32
    return %arg1, %c0_i32, %c0_i32_0, %c0_i32_1 : i32, i32, i32, i32
  }
  func.func @transform_2(%arg0: i32, %arg1: i32) -> (i32, i32, i32, i32) {
    %c0_i32 = arith.constant 0 : i32
    %c0_i32_0 = arith.constant 0 : i32
    %c0_i32_1 = arith.constant 0 : i32
    %c0_i32_2 = arith.constant 0 : i32
    return %arg1, %c0_i32, %c0_i32_0, %c0_i32_1 : i32, i32, i32, i32
  }
  func.func @transform_3(%arg0: i32, %arg1: i32) -> (i32, i32, i32) {
    %c0_i32 = arith.constant 0 : i32
    %c0_i32_0 = arith.constant 0 : i32
    %c0_i32_1 = arith.constant 0 : i32
    return %arg1, %c0_i32, %c0_i32_0 : i32, i32, i32
  }
  func.func @transform_4(%arg0: i32, %arg1: i32) -> (i32, i32) {
    %c0_i32 = arith.constant 0 : i32
    %c0_i32_0 = arith.constant 0 : i32
    %c0_i32_1 = arith.constant 0 : i32
    return %c0_i32, %c0_i32_0 : i32, i32
  }
  func.func @transform_5(%arg0: i32, %arg1: i32) -> (i32, i32, i32) {
    %c0_i32 = arith.constant 0 : i32
    %c0_i32_0 = arith.constant 0 : i32
    %c0_i32_1 = arith.constant 0 : i32
    return %arg0, %c0_i32, %c0_i32_0 : i32, i32, i32
  }
}

</mosaic_0001>

<bundles_post_ra>
// kernel: tpu_custom_call.1
= control target key start
LH: loop header
LB: loop body
LE: loop exit
PB: predicated region body
PF: predicated region fallthrough
CT: control target
= control target key end

     0   :  { %10 = vsyncpa [#allocation4], 0  ;;  %s1047_s0 = inlined_call_operand.vmem [shape: bf16[2,8,32], index: 0, kind: input, shape index: {}]   ;;  %s1048_s1 = inlined_call_operand.vmem [shape: bf16[4,3,32,8], index: 1, kind: input, shape index: {}]   ;;  %s1049_s2 = inlined_call_operand.vmem [shape: f32[4,3,1,8], index: 2, kind: input, shape index: {}]   ;;  %s1050_s3 = inlined_call_operand.vmem [shape: bf16[4,8,32], index: 3, kind: input, shape index: {}]   ;;  %s1051_s4 = inlined_call_operand.vmem [shape: f32[1,32], index: 4, kind: input, shape index: {}]   ;;  %s1052_s5 = inlined_call_operand.hbm [shape: f32[2,8,32], index: 5, kind: output, shape index: {}]  }
   0x1   :  { %12 = vsyncpa [#allocation4 + $0x1], 0  ;;  %s884_s18 = smov 0   ;;  %s886_s19 = smov 0  }
   0x2   :  { %s888_s20 = smov 0   ;;  %s890_s21 = smov 0  }
   0x3   :  { %s892_s22 = smov 0   ;;  %s894_s23 = smov 0  }
   0x4   :  { %s896_s24 = smov 0   ;;  %s898_s25 = smov 0  }
   0x5 LB: > { %1059 = sst [smem:[#allocation6_spill]] %s831_s20  ;;  %s614_s26 = sadd.s32 4294967295, %s851_s25   ;;  %s851_s25 = sphi %s898_s25, %s18_s25   ;;  %s847_s24 = sphi %s896_s24, %s1075_s24   ;;  %s843_s23 = sphi %s894_s23, %s1074_s23   ;;  %s839_s22 = sphi %s892_s22, %s1073_s22   ;;  %s835_s21 = sphi %s890_s21, %s1072_s21   ;;  %s831_s20 = sphi %s888_s20, %s1071_s20   ;;  %s827_s19 = sphi %s886_s19, %s1077_s19   ;;  %s823_s18 = sphi %s884_s18, %s1076_s18  }
   0x6   : > { %1060 = sst [smem:[#allocation7_spill]] %s843_s23  ;;  %s615_s27 = sadd.s32 4294967294, %s851_s25  }
   0x7   : > { %1061 = sst [smem:[#allocation8_spill]] %s847_s24  ;;  %s27_s28 = sadd.s32 1, %s843_s23 }
   0x8   : > { %p28_p0 = scmp.ge.s32.totalorder %s27_s28, 4  ;;  %s30_s29 = sadd.s32 1, %s847_s24 }
   0x9   : > { %p172_p1 = scmp.ne.s32.totalorder %s831_s20, %s827_s19  ;;  %p173_p2 = scmp.eq.s32.totalorder %s614_s26, 7 }
   0xa   : > { %s1079_s28 = smov (%p28_p0, %s27_s28), 0  ;;  %s1081_s29 = smov (!%p28_p0, %s30_s29), %s847_s24 }
   0xb   : > { %1062 = sst [smem:[#allocation9_spill]] %s1079_s28  ;;  %p933_p3 = por %p173_p2, %p172_p1 }
   0xc   : > { %p178_p4 = scmp.ne.s32.totalorder %s827_s19, %s823_s18  ;;  %p32_p5 = scmp.ge.s32.totalorder %s1081_s29, 2 }
   0xd   : > { %p179_p6 = scmp.eq.s32.totalorder %s615_s27, 7  ;;  %p618_p7 = scmp.ge.s32.totalorder %s851_s25, 1 }
   0xe   : > { %p229_p8 = scmp.lt.s32.totalorder %s851_s25, 9  ;;  %s1083_s29 = smov (%p32_p5, %s1081_s29), 0 }
   0xf   : > { %1064 = sst [smem:[#allocation10_spill]] %s1083_s29  ;;  %p943_p9 = por %p179_p6, %p178_p4 }
  0x10   : > { %p230_p10 = pnand %p618_p7, %p229_p8  ;;  %s159_s7 = ssub.s32 %s847_s24, %s1083_s29 }
  0x11   : > { %s1065_s6 = scalar_select %p943_p9, 1, 0 }
  0x12   : > { %s162_s8 = sadd.s32 1, %s831_s20  ;;  %p160_p11 = scmp.eq.s32.totalorder %s159_s7, 0 }
  0x13   : > { %1066 = sst [smem:[#allocation11_spill]] %s1065_s6  ;;  %233 = sbr.rel (%p230_p10) target bundleno = 729 (0x2d9), region = 40 }
  0x14   : > { %s951_s9 = scalar_select %p160_p11, %s831_s20, %s162_s8  }
  0x15   : > { %s1056_s10 = sand.u32 (!%p230_p10), 1, %s827_s19   ;;  %p269_p12 = scmp.lt.s32.totalorder (!%p230_p10), %s839_s22, 1 }
  0x16   : > { %1067 = sst [smem:[#allocation12_spill]] %s951_s9  ;;  %s957_s11 = sshll.u32 (!%p230_p10), %s1056_s10, 3 }
  0x17   : > { %p273_p13 = scmp.lt.s32.totalorder (!%p230_p10), %s835_s21, 3  ;;  %s268_s6 = scalar_lea.vmem (!%p230_p10), [#allocation3], %s957_s11 }
  0x18   : > { %s270_s12 = scalar_select %p269_p12, %s839_s22, 1 }
  0x19   : > { %s274_s13 = scalar_select %p273_p13, %s835_s21, 3 }
  0x1a   : > { %s620_s14 = sshll.u32 %s270_s12, 2  ;;  %p623_p0 = scmp.ne.s32.totalorder %s835_s21, 0 }
  0x1b   : > { %s272_s17 = scalar_lea.vmem %s1047_s0, %s620_s14  ;;  %s675_s26 = smul.u32 48, %s274_s13 }
  0x1c   : > { %s676_s27 = smul.u32 3, %s274_s13  ;;  %s622_s7 = sshll.u32 %s274_s13, 2 }
  0x1d   : > { %s277_s28 = scalar_lea.vmem %s1048_s1, %s675_s26  ;;  %s971_s10 = scalar_lea.vmem %s1050_s3, %s622_s7 }
  0x1e   : > { %s976_s12 = scalar_lea.vmem %s1049_s2, %s676_s27  ;;  %290 = sbr.rel (%p623_p0) target bundleno = 37 (0x25), region = 44 }
  0x23   : > { %vm291_vm0 = vcmask 261120   ;;  %v853_v0 = vmov 0.0  }
  0x24   : > { %292 = vst.msk [vmem:[#allocation2] sm:$0xff] %vm291_vm0, %v853_v0 }
  0x25 PF: > { %v670_v1 = vld [vmem:[%s277_s28 + $0x8] sm:$0xff]  ;;  %v672_v2 = vld [vmem:[%s277_s28 + $0x18] sm:$0xff]  ;;  %v669_v3 = vld [vmem:[%s277_s28] sm:$0xff]  ;;  %vm314_vm1 = vcmask 261120   ;;  %vm405_vm2 = vcmask 64512   ;;  %vm438_vm3 = vcmask 1043456  }
  0x26   : > { %324 = vmatpush.bf16.msra.mxu0 %v670_v1  ;;  %359 = vmatpush.bf16.msra.mxu1 %v672_v2  ;;  %v671_v4 = vld [vmem:[%s277_s28 + $0x10] sm:$0xff]  ;;  %v293_v5 = vld [vmem:[%s272_s17] sm:$0xf]  ;;  %v674_v6 = vld [vmem:[%s277_s28 + $0x28] sm:$0xff]  ;;  %p664_p1 = scmp.ne.s32.totalorder %s835_s21, 3 }
  0x27   : > { %394 = vmatpush.bf16.msra.mxu2 %v674_v6  ;;  %v673_v7 = vld [vmem:[%s277_s28 + $0x20] sm:$0xff] }
  0x28   : > { %v749_v8 = vld [vmem:[%s976_s12] ss:$0 sm:$0xff]  ;;  %v750_v9 = vld [vmem:[%s976_s12 + $0x1] ss:$0 sm:$0xff]  ;;  %v751_v20 = vld [vmem:[%s976_s12 + $0x2] ss:$0 sm:$0xff] }
  0x29   : > { %v459_v29 = vld [vmem:[%s971_s10] sm:$0xf] }
  0x2a   : > { %325 = vmatpush.bf16.msra.mxu0 %v669_v3  ;;  %360 = vmatpush.bf16.msra.mxu1 %v671_v4  ;;  %v464_v30 = vsel %vm438_vm3, %v459_v29, 0 }
  0x2b   : > { %395 = vmatpush.bf16.msra.mxu2 %v673_v7  ;;  %v457_v43 = vld [vmem:[#allocation2] sm:$0xff] }
  0x2d   : > { %632 = vmatmul.msk.bf16.vlgmr.msra.gmra.mxu0 %vm314_vm1, %v293_v5  ;;  %646 = vmatmul.msk.bf16.vlgmr.msra.gmra.mxu1 %vm314_vm1, %v293_v5 }
  0x2e   : > { %660 = vmatmul.msk.bf16.vlgmr.msra.gmra.mxu2 %vm314_vm1, %v293_v5  ;;  %473 = vmatpush.bf16.msrb.mxu1 %v464_v30 }
  0xaa   : > { %v327_v10 = vpop.f32.mrf.mxu0  ;;  %v362_v11 = vpop.f32.mrf.mxu1 }
  0xab   : > { %v328_v12 = vadd.f32 %v749_v8, %v327_v10  ;;  %v363_v13 = vadd.f32 %v750_v9, %v362_v11 }
  0xad   : > { %v403_v14 = vpack.c.bf16 %v363_v13, %v363_v13  ;;  %v401_v15 = vmul.f32 0.35355338, %v328_v12 }
  0xaf   : > { %v410_v16 = vsel %vm405_vm2, %v403_v14, 0  ;;  %v402_v19 = vpack.c.bf16 %v401_v15, %v401_v15 }
  0xb0   : > { %419 = vmatpush.bf16.xpose.msra.mxu3 %v410_v16 }
  0xb1   : > { %v397_v21 = vpop.f32.mrf.mxu2 }
  0xb2   : > { %v329_v17 = vpop.f32.mrf.mxu0  ;;  %v364_v18 = vpop.f32.mrf.mxu1  ;;  %v398_v22 = vadd.f32 %v751_v20, %v397_v21 }
  0xb4   : > { %v404_v23 = vpack.c.bf16 %v398_v22, %v398_v22 }
  0xb6   : > { %v440_v24 = vsel %vm438_vm3, %v404_v23, 0 }
  0xb7   : > { %661 = vmatmul.msk.bf16.vlgmr.msra.gmra.mxu3 %vm405_vm2, %v402_v19  ;;  %449 = vmatpush.bf16.msrb.mxu0 %v440_v24 }
  0xb9   : > { %v399_v25 = vpop.f32.mrf.mxu2 }
 0x13a   : > { %v421_v26 = vpop.f32.mrf.mxu3 }
 0x13b   : > { %v425_v27 = vsel %vm405_vm2, %v421_v26, -inf }
 0x13c   : > { %426 = vmax.xlane.f32.xlu0 %v425_v27 }
 0x142   : > { %v423_v28 = vpop.f32.mrf.mxu3 }
 0x1af   : > { %v427_v31 = vpop.xlane.xlu0 %426 }
 0x1b0   : > { %v428_v32 = vsub.f32 %v421_v26, %v427_v31 }
 0x1b2   : > { %v429_v33 = vmul.f32 1.442695, %v428_v32 }
 0x1b4   : > { %752 = vpow2.f32 %v429_v33 }
 0x1ba   : > { %v753_v34 = vpop.eup %752 }
 0x1bb   : > { %v431_v35 = vsel %vm405_vm2, %v753_v34, 0.0  ;;  %v434_v36 = vpack.c.bf16 %v753_v34, %v753_v34 }
 0x1bc   : > { %432 = vadd.xlane.f32.xlu0 %v431_v35 }
 0x1bd   : > { %662 = vmatmul.msk.bf16.vlgmr.msrb.gmra.mxu0 %vm405_vm2, %v434_v36 }
 0x22f   : > { %v433_v37 = vpop.xlane.xlu0 %432 }
 0x230   : > { %754 = vrcp.f32 %v433_v37 }
 0x236   : > { %v755_v38 = vpop.eup %754 }
 0x23a   : > { %v451_v39 = vpop.f32.mrf.mxu0 }
 0x23b   : > { %v456_v40 = vmul.f32 %v755_v38, %v451_v39 }
 0x23d   : > { %v458_v41 = vpack.c.bf16 %v456_v40, %v456_v40 }
 0x23f   : > { %663 = vmatmul.msk.bf16.vlgmr.msrb.gmra.mxu1 %vm405_vm2, %v458_v41 }
 0x242   : > { %v453_v42 = vpop.f32.mrf.mxu0 }
 0x2bc   : > { %v475_v44 = vpop.f32.mrf.mxu1 }
 0x2bd   : > { %v479_v45 = vadd.f32 %v475_v44, %v457_v43 }
 0x2bf   : > { %480 = vst.msk [vmem:[#allocation2] sm:$0xff] %vm314_vm1, %v479_v45 }
 0x2c0   : > { %484 = sbr.rel (%p664_p1) target bundleno = 714 (0x2ca), region = 48 }
 0x2c4   : > { %v477_v46 = vpop.f32.mrf.mxu1 }
 0x2c5   : > { %v756_v48 = vld [vmem:[%s1051_s4] ss:$0 sm:$0xff] }
 0x2c6   : > { %v485_v47 = vld [vmem:[#allocation2] sm:$0xff] }
 0x2c7   : > { %v490_v49 = vadd.f32 %v756_v48, %v485_v47 }
 0x2c9   : > { %491 = vst.msk [vmem:[%s268_s6] sm:$0xff] %vm314_vm1, %v490_v49 }
 0x2ca PF: > { %s666_s24 = sshll.u32 %s839_s22, 3  ;;  %s505_s9 = sshll.u32 %s268_s6, 4  ;;  %s506_s9 = int_to_ptr.vmem [resolvable:$true] %s505_s9 }
 0x2cb   : > { %s503_s21 = scalar_lea.hbm %s1052_s5, %s666_s24  ;;  %s1068_s13 = sand.u32 1, %s827_s19  }
 0x2cc   : > { %s507_s10 = sshll.u32 %s503_s21, 4  ;;  %s493_s14 = scalar_lea.sflag [#allocation4], %s1068_s13  ;;  %s508_s10 = int_to_ptr.hbm [resolvable:$true] %s507_s10 }
 0x2cd   : > { %s771_s15 = sshra.s32 %s508_s10, 4  ;;  %s777_s26 = scalar_lea.hbm %s1052_s5, 16  ;;  %s772_s15 = int_to_ptr.hbm [resolvable:$true] %s771_s15 }
 0x2ce   : > { %s773_s16 = scalar_lea.hbm %s772_s15, 8  ;;  %p778_p6 = scmp.lt.s32.totalorder %s772_s15, %s1052_s5 }
 0x2cf   : > { %p774_p2 = scmp.ne.s32.totalorder %s772_s15, %s773_s16  ;;  %p779_p7 = scmp.lt.s32.totalorder %s777_s26, %s773_s16 }
 0x2d1   : > { %p775_p4 = pnand %p774_p2, %p933_p3  ;;  %p780_p8 = por %p779_p7, %p778_p6 }
 0x2d3   : > { %p776_p5 = pneg %p775_p4 }
 0x2d5   : > { %p781_p10 = pnand %p780_p8, %p776_p5 }
 0x2d7   : > { %784 = shalt.err (!%p781_p10)
}
 0x2d8   : > { %677 = dma.vmem_to_hbm [thread:$0]  (%p933_p3), %s506_s9, 128, %s508_s10, %s493_s14  }
 0x2d9 PF: > { %p683_p11 = scmp.ge.s32.totalorder %s851_s25, 2  ;;  %s519_s11 = sand.u32 1, %s823_s18  }
 0x2da   : > { %s520_s8 = scalar_lea.sflag [#allocation4], %s519_s11 }
 0x2db   : > { %p680_p12 = pnand %p683_p11, %p943_p9 }
 0x2dd   : > { %p681_p13 = pneg %p680_p12 }
 0x2df   : > { %818 = dma.done.wait (%p681_p13), %s520_s8, 128  }
 0x2e0   : > { %820 = vsyncadd (%p681_p13), %s520_s8, 4294967168  ;;  %s18_s25 = sadd.s32 1, %s851_s25   ;;  %s1070_s12 = sld [smem:[#allocation6_spill]] }
 0x2e1   : > { %p15_p0 = scmp.ge.s32.totalorder %s18_s25, 10   ;;  %s1071_s20 = sld [smem:[#allocation12_spill]] }
 0x2e2   : > { %s1072_s21 = sld [smem:[#allocation7_spill]]  ;;  %s1076_s18 = smov %s827_s19 }
 0x2e3   : > { %s1073_s22 = sld [smem:[#allocation8_spill]]  ;;  %17 = sbr.rel (!%p15_p0) target bundleno = 5 (0x5), region = 96 }
 0x2e4   : > { %s1074_s23 = sld [smem:[#allocation9_spill]] }
 0x2e5   : > { %s1075_s24 = sld [smem:[#allocation10_spill]] }
 0x2e6   : > { %s1077_s19 = smov %s1070_s12 }
 0x2e8   :  { %526 = vsyncpa [#allocation4], 1 }
 0x2e9   :  { %528 = vsyncpa [#allocation4 + $0x1], 1 }

</bundles_post_ra>
